<compile_context>
chip_gen: v6e
topology: v6e:2x2x1
jax: 0.10.0
libtpu: 0.0.40
codegen_flags: <defaults>
</compile_context>

<pallas_src>
import jax
import jax.numpy as jnp
from jax.experimental import pallas as pl
from jax.experimental.pallas import tpu as pltpu


# ----------------------------------------------------------------------------
# Kernels
# ----------------------------------------------------------------------------

def _cls_head_small_kernel(x_ref, w_ref, b_ref, o_ref):
    """Single-block path for tiny activations (whole problem fits VMEM).

    x_ref: (N, C, S)   w_ref: (C, K) pre-scaled by 1/S   b_ref: (1, K)
    o_ref: (N, K)
    """
    x = x_ref[...].astype(jnp.float32)
    pooled = jnp.sum(x, axis=-1)                            # (N, C); 1/S is in w
    scores = jnp.dot(pooled, w_ref[...],
                     preferred_element_type=jnp.float32)
    o_ref[...] = (scores + b_ref[...]).astype(o_ref.dtype)


def _cls_head_tiled_kernel(x_ref, w_ref, b_ref, o_ref, acc_ref):
    """Tiled / software-pipelined path.

    grid = (N // tn, S // ts); axis 0 = batch tiles ("parallel"),
    axis 1 = streamed pooling-window tiles ("arbitrary" reduction).

    x_ref:   (tn, C, ts)  current activation tile (C on sublanes, S on lanes)
    w_ref:   (C, K)       resident weight, pre-scaled by 1/S
    b_ref:   (1, K)       resident bias
    o_ref:   (tn, K)      written once at the last S step
    acc_ref: (tn, C) f32  running sum over the pooling window
    """
    s_idx = pl.program_id(1)

    @pl.when(s_idx == 0)
    def _():
        acc_ref[...] = jnp.zeros_like(acc_ref)

    # Partial global-average-pool: reduce this S chunk over the lane axis (XLU).
    # Cast per-tile (not whole-array) so HBM/DMA traffic stays in input dtype.
    acc_ref[...] += jnp.sum(x_ref[...].astype(jnp.float32), axis=-1)

    @pl.when(s_idx == pl.num_programs(1) - 1)
    def _():
        # Linear layer on the MXU; the 1/S mean scale rides inside w_ref.
        scores = jnp.dot(acc_ref[...], w_ref[...],
                         preferred_element_type=jnp.float32)
        o_ref[...] = (scores + b_ref[...]).astype(o_ref.dtype)


# ----------------------------------------------------------------------------
# Wrapper
# ----------------------------------------------------------------------------

_SMALL_ACT_BYTES = 1 << 20           # <= 1 MiB activation -> grid-free path
_X_TILE_BUDGET_BYTES = 8 << 20       # per x pipeline buffer (safe on v7x 64 MiB VMEM)
_MAX_TS = 512                        # streamed-dim tile; >=512 ~ 85% HBM roofline


def _pick_batch_tile(n):
    # Output block is (tn, K): tn is second-to-last, so it must be a multiple
    # of 8 or equal to the full N.
    if n > 8 and n % 8 == 0:
        return 8
    return n


def _pick_s_tile(s_total, tn, c, itemsize):
    # Largest multiple of 128 dividing S, capped at _MAX_TS and fitting the
    # per-buffer VMEM budget.  Returns None if no such tile exists.
    best = None
    ts = 128
    while ts <= min(_MAX_TS, s_total):
        if s_total % ts == 0 and tn * c * ts * itemsize <= _X_TILE_BUDGET_BYTES:
            best = ts
        ts += 128
    return best


def cls_head_forward(x_nchw, weight, bias, *, temporal_size=1):
    """ClsHead.forward (eval, with_avg_pool=True, embedding=False).

    x_nchw: (N, C, H, W) feature map (PyTorch NCHW; unsqueezed to T=1).
    weight: (num_classes, in_channels)  -- PyTorch nn.Linear layout.
    bias:   (num_classes,)
    Returns (N, num_classes) class scores.
    """
    # NOTE: AvgPool3d window is assumed to equal (T, H, W) (global avg pool),
    # i.e. the module's intended spatial/temporal_size configuration.
    n, c, h, w = x_nchw.shape
    s = temporal_size * h * w
    # unsqueeze(2) + flatten the pooling window: pure reshape, no HBM transpose.
    x_ncs = x_nchw.reshape(n, c, s)

    k = weight.shape[0]
    # Fold the 1/S mean scale into the weight so the kernel only sums.
    w_t = jnp.transpose(weight, (1, 0)).astype(jnp.float32) * (1.0 / float(s))
    b_2d = bias.reshape(1, k).astype(jnp.float32)

    out_shape = jax.ShapeDtypeStruct((n, k), x_nchw.dtype)
    act_bytes = x_ncs.size * x_ncs.dtype.itemsize

    if act_bytes <= _SMALL_ACT_BYTES:
        # Tiny problem: one VMEM block, no grid (grid-step overhead dominates).
        vmem = pl.BlockSpec(memory_space=pltpu.MemorySpace.VMEM)
        return pl.pallas_call(
            _cls_head_small_kernel,
            out_shape=out_shape,
            in_specs=[vmem, vmem, vmem],
            out_specs=vmem,
        )(x_ncs, w_t, b_2d)

    # Tiled, software-pipelined path.
    tn = _pick_batch_tile(n)
    ts = _pick_s_tile(s, tn, c, x_ncs.dtype.itemsize)
    if ts is None:
        # S has no usable multiple-of-128 divisor: tile over batch only and
        # keep the full S extent on lanes (block dim == full array dim).
        ts = s

    grid = (n // tn, s // ts)
    return pl.pallas_call(
        _cls_head_tiled_kernel,
        out_shape=out_shape,
        grid_spec=pltpu.PrefetchScalarGridSpec(
            num_scalar_prefetch=0,
            grid=grid,
            in_specs=[
                pl.BlockSpec((tn, c, ts), lambda i, si: (i, 0, si)),
                pl.BlockSpec((c, k), lambda i, si: (0, 0)),   # resident weight
                pl.BlockSpec((1, k), lambda i, si: (0, 0)),   # resident bias
            ],
            out_specs=pl.BlockSpec((tn, k), lambda i, si: (i, 0)),
            scratch_shapes=[pltpu.VMEM((tn, c), jnp.float32)],
        ),
        compiler_params=pltpu.CompilerParams(
            dimension_semantics=("parallel", "arbitrary"),
            # Above v5e/v6e defaults (16/32 MiB) to allow big tiles, with
            # headroom under v7x's 64 MiB physical VMEM.
            vmem_limit_bytes=48 * 1024 * 1024,
        ),
    )(x_ncs, w_t, b_2d)


# ----------------------------------------------------------------------------
# Reference & test
# ----------------------------------------------------------------------------

def cls_head_reference(x_nchw, weight, bias):
    pooled = jnp.mean(x_nchw.astype(jnp.float32), axis=(2, 3))     # global avg pool
    scores = jnp.dot(pooled, weight.T.astype(jnp.float32),
                     precision=jax.lax.Precision.HIGHEST) + bias.astype(jnp.float32)
    return scores.astype(x_nchw.dtype)


if __name__ == "__main__":
    init_std = 0.01
    key = jax.random.PRNGKey(0)

    # --- config 1: tiny shapes -> single-block (grid-free) path --------------
    batch, in_channels, spatial, num_classes = 2, 32, 8, 16
    k1, k2, key = jax.random.split(key, 3)
    x_small = jax.random.normal(k1, (batch, in_channels, spatial, spatial),
                                dtype=jnp.float32)
    # init_weights(): normal_(weight, 0, init_std); constant_(bias, 0)
    w_small = init_std * jax.random.normal(k2, (num_classes, in_channels),
                                           dtype=jnp.float32)
    b_small = jnp.zeros((num_classes,), dtype=jnp.float32)

    out_small = jax.block_until_ready(cls_head_forward(x_small, w_small, b_small))
    ref_small = cls_head_reference(x_small, w_small, b_small)
    assert out_small.shape == (batch, num_classes)
    assert jnp.allclose(out_small, ref_small, atol=5e-5, rtol=1e-3)

    # --- config 2: larger shapes -> tiled / pipelined path (grid = (2, 2)) ---
    batch2, ch2, sp2, cls2 = 16, 256, 32, 101       # S = 1024, tn = 8, ts = 512
    k3, k4, key = jax.random.split(key, 3)
    x_big = jax.random.normal(k3, (batch2, ch2, sp2, sp2), dtype=jnp.float32)
    w_big = init_std * jax.random.normal(k4, (cls2, ch2), dtype=jnp.float32)
    b_big = 0.01 * jax.random.normal(key, (cls2,), dtype=jnp.float32)

    out_big = jax.block_until_ready(cls_head_forward(x_big, w_big, b_big))
    ref_big = cls_head_reference(x_big, w_big, b_big)
    assert out_big.shape == (batch2, cls2)
    assert jnp.allclose(out_big, ref_big, atol=5e-5, rtol=1e-3)

    print("KERNEL_OK")
</pallas_src>

<mosaic_0001>
module attributes {stable_mosaic.version = 11 : i64} {
  func.func @_cls_head_small_kernel(%arg0: memref<2x32x64xf32, #tpu.memory_space<vmem>>, %arg1: memref<32x16xf32, #tpu.memory_space<vmem>>, %arg2: memref<1x16xf32, #tpu.memory_space<vmem>>, %arg3: memref<2x16xf32, #tpu.memory_space<vmem>>) attributes {dimension_semantics = [], scalar_prefetch = 0 : i64, scratch_operands = 0 : i64, tpu.core_type = #tpu.core_type<tc>} {
    %c0 = arith.constant 0 : index
    %c0_0 = arith.constant 0 : index
    %c0_1 = arith.constant 0 : index
    %0 = vector.load %arg0[%c0, %c0_0, %c0_1] : memref<2x32x64xf32, #tpu.memory_space<vmem>>, vector<2x32x64xf32>
    %cst = arith.constant dense<0.000000e+00> : vector<2x32xf32>
    %1 = vector.multi_reduction <add>, %0, %cst [2] : vector<2x32x64xf32> to vector<2x32xf32>
    %c0_2 = arith.constant 0 : index
    %c0_3 = arith.constant 0 : index
    %2 = vector.load %arg1[%c0_2, %c0_3] : memref<32x16xf32, #tpu.memory_space<vmem>>, vector<32x16xf32>
    %cst_4 = arith.constant dense<0.000000e+00> : vector<2x16xf32>
    %3 = tpu.matmul %1, %2, %cst_4 {dimension_numbers = #tpu.dot_dimension_numbers<[1], [0], [0], [1], [0, 0, 1, 1], [], []>} : vector<2x32xf32>, vector<32x16xf32>, vector<2x16xf32> -> vector<2x16xf32>
    %c0_5 = arith.constant 0 : index
    %c0_6 = arith.constant 0 : index
    %4 = vector.load %arg2[%c0_5, %c0_6] : memref<1x16xf32, #tpu.memory_space<vmem>>, vector<1x16xf32>
    %5 = vector.broadcast %4 : vector<1x16xf32> to vector<2x16xf32>
    %6 = arith.addf %3, %5 : vector<2x16xf32>
    %c0_7 = arith.constant 0 : index
    %c0_8 = arith.constant 0 : index
    %7 = vector.load %arg3[%c0_7, %c0_8] : memref<2x16xf32, #tpu.memory_space<vmem>>, vector<2x16xf32>
    tpu.vector_store %arg3[%c0_7, %c0_8], %6 {strides = array<i32>} : memref<2x16xf32, #tpu.memory_space<vmem>>, vector<2x16xf32>,
    return
  }
}

</mosaic_0001>

<bundles_post_ra>
// kernel: tpu_custom_call.1
= control target key start
LH: loop header
LB: loop body
LE: loop exit
PB: predicated region body
PF: predicated region fallthrough
CT: control target
= control target key end

     0   :  { %8 = vsyncpa [#allocation3], 0  ;;  %s342_s0 = inlined_call_operand.hbm [shape: f32[2,32,64], index: 0, kind: input, shape index: {}]   ;;  %s343_s1 = inlined_call_operand.vmem [shape: f32[32,16], index: 1, kind: input, shape index: {}]   ;;  %s344_s2 = inlined_call_operand.vmem [shape: f32[1,16], index: 2, kind: input, shape index: {}]   ;;  %s345_s3 = inlined_call_operand.hbm [shape: f32[2,16], index: 3, kind: output, shape index: {}]  }
   0x1   :  { %9 = vsyncpa [#allocation4], 0  ;;  %s287_s12 = smov [#allocation2]  }
   0x2   :  { %s15_s13 = sshll.u32 %s287_s12, 4  ;;  %s16_s13 = int_to_ptr.vmem [resolvable:$true] %s15_s13 }
   0x3   :  { %s251_s14 = scalar_lea.vmem %s16_s13, 1024  ;;  %p256_p1 = scmp.lt.s32.totalorder %s16_s13, %s16_s13 }
   0x4   :  { %p252_p0 = scmp.ne.s32.totalorder %s16_s13, %s251_s14  ;;  %p257_p2 = scmp.lt.s32.totalorder %s251_s14, %s251_s14 }
   0x6   :  { %p258_p3 = por %p257_p2, %p256_p1 }
   0x8   :  { %p259_p4 = pnand %p258_p3, %p252_p0 }
   0xa   :  { %262 = shalt.err (!%p259_p4)
}
   0xb   :  { %s288_s15 = smov 128   ;;  %s289_s16 = smov 8  }
   0xc   :  { %21 = dma.hbm_to_vmem [thread:$0]  %s342_s0, 1024, %s16_s13, [#allocation3], %s288_s15, %s288_s15, %s289_s16  }
   0xd   :  { %283 = dma.done.wait [#allocation3], 1024  }
   0xe   :  { %284 = vsyncadd [#allocation3], 4294966272  ;;  %vm37_vm0 = vcmask 523264   ;;  %v33_v0 = vld [vmem:[#allocation2 + $0x20] sm:$0xff]  ;;  %v34_v2 = vld [vmem:[#allocation2 + $0x28] sm:$0xff]  ;;  %v290_v16 = vmov 0.0   ;;  %v81_v21 = vlaneseq }
   0xf   :  { %v29_v1 = vld [vmem:[#allocation2] sm:$0xff]  ;;  %v50_v3 = vsel %vm37_vm0, %v33_v0, 0.0  ;;  %v30_v5 = vld [vmem:[#allocation2 + $0x8] sm:$0xff]  ;;  %v53_v6 = vsel %vm37_vm0, %v34_v2, 0.0  ;;  %v35_v8 = vld [vmem:[#allocation2 + $0x30] sm:$0xff]  ;;  %226 = vmatprep.subr.mxu0 %v290_v16  ;;  %vm291_vm1 = vmmov 0  }
  0x10   :  { %v38_v4 = vsel %vm37_vm0, %v29_v1, 0.0  ;;  %51 = vadd.xlane.f32.xlu1 %v50_v3  ;;  %v41_v7 = vsel %vm37_vm0, %v30_v5, 0.0  ;;  %v31_v9 = vld [vmem:[#allocation2 + $0x10] sm:$0xff]  ;;  %v56_v10 = vsel %vm37_vm0, %v35_v8, 0.0  ;;  %v36_v12 = vld [vmem:[#allocation2 + $0x38] sm:$0xff]  ;;  %v63_v19 = vld [vmem:[%s343_s1 + $0x8] sm:$0xff]  ;;  %234 = vmatprep.mubr.msk.f32.mxu0 %vm291_vm1, %v290_v16 }
  0x11   :  { %39 = vadd.xlane.f32.xlu0 %v38_v4  ;;  %v44_v11 = vsel %vm37_vm0, %v31_v9, 0.0  ;;  %v32_v13 = vld [vmem:[#allocation2 + $0x18] sm:$0xff]  ;;  %v59_v14 = vsel %vm37_vm0, %v36_v12, 0.0  ;;  %v64_v18 = vld [vmem:[%s343_s1 + $0x10] sm:$0xff]  ;;  %v62_v20 = vld [vmem:[%s343_s1] sm:$0xff]  ;;  %v82_v22 = vand.u32 127, %v81_v21 }
  0x12   :  { %v47_v15 = vsel %vm37_vm0, %v32_v13, 0.0  ;;  %v65_v17 = vld [vmem:[%s343_s1 + $0x18] sm:$0xff]  ;;  %v84_v27 = vshrl.u32 %v81_v21, 7  ;;  %vm92_vm2 = vcmask 130112   ;;  %vm99_vm3 = vcmask 195712   ;;  %s292_s27 = smov [#allocation5]  }
  0x13   :  { %227 = vmatpush3.msra.mxu0 %v65_v17  ;;  %v87_v25 = vadd.s32 4294967288, %v82_v22  ;;  %v94_v26 = vadd.s32 4294967280, %v82_v22  ;;  %v101_v31 = vadd.s32 4294967272, %v82_v22  ;;  %vm106_vm4 = vcmask 261312   ;;  %v219_v54 = vld [vmem:[%s344_s2] ss:$0 sm:$0xff] }
  0x14   :  { %54 = vadd.xlane.f32.xlu1 %v53_v6  ;;  %228 = vmatprep.subr.mxu0 %v290_v16  ;;  %v85_v33 = vsub.s32 %v82_v22, %v84_v27  ;;  %vm127_vm5 = vcmask 1041409   ;;  %vm129_vm6 = vcmask 261120   ;;  %s210_s28 = sshll.u32 %s292_s27, 4  ;;  %vm202_vm7 = vcmask 123904   ;;  %s211_s28 = int_to_ptr.vmem [resolvable:$true] %s210_s28 }
  0x15   :  { %42 = vadd.xlane.f32.xlu0 %v41_v7  ;;  %229 = vmatpush3.msra.mxu0 %v64_v18  ;;  %v90_v30 = vsub.s32 %v87_v25, %v84_v27  ;;  %v97_v32 = vsub.s32 %v94_v26, %v84_v27  ;;  %v104_v38 = vsub.s32 %v101_v31, %v84_v27  ;;  %s263_s29 = scalar_lea.vmem %s211_s28, 32  ;;  %p268_p6 = scmp.lt.s32.totalorder %s211_s28, %s211_s28 }
  0x16   :  { %230 = vmatprep.subr.mxu0 %v290_v16  ;;  %p264_p5 = scmp.ne.s32.totalorder %s211_s28, %s263_s29  ;;  %p269_p7 = scmp.lt.s32.totalorder %s263_s29, %s263_s29 }
  0x17   :  { %231 = vmatpush3.msra.mxu0 %v63_v19 }
  0x18   :  { %57 = vadd.xlane.f32.xlu1 %v56_v10  ;;  %232 = vmatprep.subr.mxu0 %v290_v16  ;;  %p270_p8 = por %p269_p7, %p268_p6 }
  0x19   :  { %45 = vadd.xlane.f32.xlu0 %v44_v11  ;;  %233 = vmatpush3.msra.mxu0 %v62_v20 }
  0x1a   :  { %p271_p9 = pnand %p270_p8, %p264_p5 }
  0x1c   :  { %60 = vadd.xlane.f32.xlu1 %v59_v14 }
  0x1d   :  { %48 = vadd.xlane.f32.xlu0 %v47_v15 }
  0x99   :  { %v52_v23 = vpop.xlane.xlu1 %51 }
  0x9a   :  { %v40_v24 = vpop.xlane.xlu0 %39  ;;  %v111_v41 = vrot.slane %v52_v23, %v85_v33 }
  0x9b   :  { %v86_v42 = vrot.slane %v40_v24, %v85_v33 }
  0x9d   :  { %v55_v28 = vpop.xlane.xlu1 %54 }
  0x9e   :  { %v43_v29 = vpop.xlane.xlu0 %42  ;;  %v115_v36 = vrot.slane %v55_v28, %v90_v30 }
  0x9f   :  { %v91_v37 = vrot.slane %v43_v29, %v90_v30 }
  0xa0   :  { %v116_v45 = vsel %vm92_vm2, %v115_v36, %v111_v41 }
  0xa1   :  { %v58_v34 = vpop.xlane.xlu1 %57  ;;  %v93_v46 = vsel %vm92_vm2, %v91_v37, %v86_v42 }
  0xa2   :  { %v46_v35 = vpop.xlane.xlu0 %45  ;;  %v120_v39 = vrot.slane %v58_v34, %v97_v32 }
  0xa3   :  { %v98_v40 = vrot.slane %v46_v35, %v97_v32 }
  0xa4   :  { %v121_v49 = vsel %vm99_vm3, %v120_v39, %v116_v45 }
  0xa5   :  { %v61_v43 = vpop.xlane.xlu1 %60  ;;  %v100_v50 = vsel %vm99_vm3, %v98_v40, %v93_v46 }
  0xa6   :  { %v49_v44 = vpop.xlane.xlu0 %48  ;;  %v125_v47 = vrot.slane %v61_v43, %v104_v38 }
  0xa7   :  { %v105_v48 = vrot.slane %v49_v44, %v104_v38 }
  0xa8   :  { %v126_v51 = vsel %vm106_vm4, %v125_v47, %v121_v49 }
  0xa9   :  { %v107_v52 = vsel %vm106_vm4, %v105_v48, %v100_v50 }
  0xaa   :  { %v128_v53 = vsel %vm127_vm5, %v126_v51, %v107_v52 }
  0xab   :  { %235 = vmatmul.mubr.msk.f32.vlgmr.msra.gmra.mxu0 %vm129_vm6, %v128_v53 }
 0x16b   :  { %v198_v55 = vpop.f32.mrf.mxu0 }
 0x16c   :  { %v199_v56 = vadd.f32 %v219_v54, %v198_v55 }
 0x16d   :  { %v236_v57 = vpop.f32.mrf.mxu0 }
 0x16e   :  { %203 = vst.msk [vmem:[#allocation5] sm:$0x3] %vm202_vm7, %v199_v56 }
 0x16f   :  { %274 = shalt.err (!%p271_p9)
}
 0x170   :  { %213 = dma.vmem_to_hbm [thread:$0]  %s211_s28, 32, %s345_s3, [#allocation4]  }
 0x171   :  { %285 = dma.done.wait [#allocation4], 32  }
 0x172   :  { %286 = vsyncadd [#allocation4], 4294967264 }
 0x173   :  { %217 = vsyncpa [#allocation3], 1 }
 0x174   :  { %218 = vsyncpa [#allocation4], 1 }

</bundles_post_ra>
